<compile_context>
chip_gen: v7x
topology: tpu7x:2x2x1
jax: 0.10.0
libtpu: 0.0.40
codegen_flags: <defaults>
</compile_context>

<pallas_src>
import functools

import jax
import jax.numpy as jnp
from jax.experimental import pallas as pl
from jax.experimental.pallas import tpu as pltpu

_LANE = 128
_BIG = 3.0e38  # effectively +/- inf for f32 min/max pass-through columns


def _round_up(x, m):
    return (x + m - 1) // m * m


def _cdiv(a, b):
    return -(-a // b)


# -----------------------------------------------------------------------------
# Kernel
# -----------------------------------------------------------------------------
def _actor_kernel(state_ref, w1_ref, w2_ref, wh_ref, tab_ref, out_ref,
                  *, hidden_pad, head_pad):
    # Constant table layout (f32, one (8, width) VMEM tile):
    #   row 0: b1   (padded to hidden_pad)
    #   row 1: b2   (padded to hidden_pad)
    #   row 2: bh   = bm || bls || 0         (padded to head_pad)
    #   row 3: cmin = -BIG | log_std_min | -BIG
    #   row 4: cmax = +BIG | log_std_max | +BIG
    b1 = tab_ref[0:1, :hidden_pad]
    b2 = tab_ref[1:2, :hidden_pad]
    bh = tab_ref[2:3, :head_pad]
    cmin = tab_ref[3:4, :head_pad]
    cmax = tab_ref[4:5, :head_pad]

    # bf16 MXU operands, f32 accumulation; bias-add / ReLU / clamp stay f32
    # (v5e has no bf16 VALU).
    x = state_ref[...].astype(jnp.bfloat16)
    h1 = jnp.maximum(
        jnp.dot(x, w1_ref[...], preferred_element_type=jnp.float32) + b1, 0.0)
    h2 = jnp.maximum(
        jnp.dot(h1.astype(jnp.bfloat16), w2_ref[...],
                preferred_element_type=jnp.float32) + b2, 0.0)
    head = jnp.dot(h2.astype(jnp.bfloat16), wh_ref[...],
                   preferred_element_type=jnp.float32) + bh

    # Per-column clamp: only log_std columns have finite bounds.
    out_ref[...] = jnp.minimum(jnp.maximum(head, cmin), cmax).astype(out_ref.dtype)


# -----------------------------------------------------------------------------
# Parameter packing (one-time, not per forward call)
# -----------------------------------------------------------------------------
def pack_actor_params(params, *, log_std_min=-20.0, log_std_max=2.0):
    """Pack raw (w1,b1,w2,b2,wm,bm,wls,bls) into the fused bf16 kernel layout."""
    w1, b1, w2, b2, wm, bm, wls, bls = params
    state_dim, hidden = w1.shape
    action_dim = wm.shape[1]

    hidden_pad = _round_up(hidden, _LANE)                     # e.g. 64 -> 128
    head_pad = _round_up(max(2 * action_dim, _LANE), _LANE)   # >= 128, lane-dense
    width = max(hidden_pad, head_pad)

    # bf16 weights, zero-padded so padded hidden columns stay exactly 0.
    w1p = jnp.zeros((state_dim, hidden_pad), jnp.bfloat16)
    w1p = w1p.at[:, :hidden].set(w1.astype(jnp.bfloat16))

    w2p = jnp.zeros((hidden_pad, hidden_pad), jnp.bfloat16)
    w2p = w2p.at[:hidden, :hidden].set(w2.astype(jnp.bfloat16))

    # Fused head weight: cols [0,A)=mean, [A,2A)=log_std, rest zero.
    whp = jnp.zeros((hidden_pad, head_pad), jnp.bfloat16)
    whp = whp.at[:hidden, :action_dim].set(wm.astype(jnp.bfloat16))
    whp = whp.at[:hidden, action_dim:2 * action_dim].set(wls.astype(jnp.bfloat16))

    # f32 constant table: biases + per-column clamp bounds.
    tab = jnp.zeros((8, width), jnp.float32)
    tab = tab.at[0, :hidden].set(b1.reshape(-1))
    tab = tab.at[1, :hidden].set(b2.reshape(-1))
    tab = tab.at[2, :action_dim].set(bm.reshape(-1))
    tab = tab.at[2, action_dim:2 * action_dim].set(bls.reshape(-1))
    tab = tab.at[3, :head_pad].set(-_BIG)
    tab = tab.at[3, action_dim:2 * action_dim].set(float(log_std_min))
    tab = tab.at[4, :head_pad].set(_BIG)
    tab = tab.at[4, action_dim:2 * action_dim].set(float(log_std_max))

    return {
        "w1": w1p, "w2": w2p, "wh": whp, "tab": tab,
        "state_dim": state_dim,
        "hidden_pad": hidden_pad,
        "action_dim": action_dim,
        "head_pad": head_pad,
    }


# -----------------------------------------------------------------------------
# Forward wrapper
# -----------------------------------------------------------------------------
def _choose_tiles(batch, block_b):
    """Balanced batch tiling: <8 rows of pad waste per tile, >=2 grid steps
    once the batch is large enough to feed both v7x TensorCores."""
    b8 = _round_up(batch, 8)
    n_steps = max(_cdiv(b8, block_b), 1)
    if b8 >= 512 and n_steps < 2:
        n_steps = 2
    tile_b = _round_up(_cdiv(b8, n_steps), 8)
    b_pad = n_steps * tile_b
    return tile_b, b_pad, n_steps


def actor_forward(state, packed, *, block_b=1024):
    """Fused Actor forward. state: [B, state_dim] float32 -> (mean, log_std)."""
    w1, w2, wh, tab = packed["w1"], packed["w2"], packed["wh"], packed["tab"]
    state_dim = packed["state_dim"]
    hidden_pad = packed["hidden_pad"]
    action_dim = packed["action_dim"]
    head_pad = packed["head_pad"]

    B = state.shape[0]
    tile_b, B_pad, n_steps = _choose_tiles(B, block_b)
    if B_pad != B:
        state = jnp.pad(state, ((0, B_pad - B), (0, 0)))

    kernel = functools.partial(
        _actor_kernel, hidden_pad=hidden_pad, head_pad=head_pad)

    out = pl.pallas_call(
        kernel,
        out_shape=jax.ShapeDtypeStruct((B_pad, head_pad), jnp.float32),
        grid_spec=pltpu.PrefetchScalarGridSpec(
            num_scalar_prefetch=0,
            grid=(n_steps,),
            in_specs=[
                # batch-tiled activations
                pl.BlockSpec((tile_b, state_dim), lambda i: (i, 0)),
                # resident weights / constants (constant index_map, single buffer)
                pl.BlockSpec(w1.shape, lambda i: (0, 0),
                             pipeline_mode=pl.Buffered(1)),
                pl.BlockSpec(w2.shape, lambda i: (0, 0),
                             pipeline_mode=pl.Buffered(1)),
                pl.BlockSpec(wh.shape, lambda i: (0, 0),
                             pipeline_mode=pl.Buffered(1)),
                pl.BlockSpec(tab.shape, lambda i: (0, 0),
                             pipeline_mode=pl.Buffered(1)),
            ],
            out_specs=pl.BlockSpec((tile_b, head_pad), lambda i: (i, 0)),
        ),
        compiler_params=pltpu.CompilerParams(
            dimension_semantics=("parallel",)),
    )(state, w1, w2, wh, tab)

    # One contiguous slice of the padded slab, then split the small block.
    heads = out[:B, :2 * action_dim]
    mean = heads[:, :action_dim]
    log_std = heads[:, action_dim:]
    return mean, log_std


# -----------------------------------------------------------------------------
# Init + pure-JAX reference
# -----------------------------------------------------------------------------
def init_actor_params(key, state_dim, action_dim, hidden_dim=64):
    """PyTorch nn.Linear-style init (uniform(-1/sqrt(fan_in), 1/sqrt(fan_in))).
    Weights stored as [in, out] (pre-transposed)."""
    def linear(k, fan_in, fan_out):
        kw, kb = jax.random.split(k)
        bound = 1.0 / jnp.sqrt(fan_in)
        w = jax.random.uniform(kw, (fan_in, fan_out), jnp.float32, -bound, bound)
        b = jax.random.uniform(kb, (1, fan_out), jnp.float32, -bound, bound)
        return w, b

    k1, k2, k3, k4 = jax.random.split(key, 4)
    w1, b1 = linear(k1, state_dim, hidden_dim)
    w2, b2 = linear(k2, hidden_dim, hidden_dim)
    wm, bm = linear(k3, hidden_dim, action_dim)
    wls, bls = linear(k4, hidden_dim, action_dim)
    return (w1, b1, w2, b2, wm, bm, wls, bls)


def actor_forward_ref(state, params, *, log_std_min=-20.0, log_std_max=2.0):
    """Pure-JAX f32 reference for correctness checking (raw params)."""
    w1, b1, w2, b2, wm, bm, wls, bls = params
    h1 = jnp.maximum(state @ w1 + b1, 0.0)
    h2 = jnp.maximum(h1 @ w2 + b2, 0.0)
    mean = h2 @ wm + bm
    log_std = jnp.clip(h2 @ wls + bls, log_std_min, log_std_max)
    return mean, log_std


if __name__ == "__main__":
    # Small shapes consistent with the module's forward.
    batch, state_dim, action_dim, hidden_dim = 8, 16, 4, 64

    key = jax.random.PRNGKey(0)
    k_params, k_state, k_state2 = jax.random.split(key, 3)

    params = init_actor_params(k_params, state_dim, action_dim, hidden_dim)
    packed = pack_actor_params(params)          # one-time packing
    state = jax.random.normal(k_state, (batch, state_dim), jnp.float32)

    mean, log_std = actor_forward(state, packed)
    jax.block_until_ready((mean, log_std))

    # Correctness vs. f32 reference (bf16 MXU operands -> relaxed tolerance).
    mean_ref, log_std_ref = actor_forward_ref(state, params)
    assert mean.shape == (batch, action_dim) and log_std.shape == (batch, action_dim)
    assert jnp.allclose(mean, mean_ref, atol=2e-2, rtol=2e-2)
    assert jnp.allclose(log_std, log_std_ref, atol=2e-2, rtol=2e-2)
    assert float(jnp.max(log_std)) <= 2.0 and float(jnp.min(log_std)) >= -20.0

    # Exercise the multi-step grid / padding path (B just above 512 -> 2 tiles).
    batch2 = 520
    state2 = jax.random.normal(k_state2, (batch2, state_dim), jnp.float32)
    mean2, log_std2 = actor_forward(state2, packed)
    jax.block_until_ready((mean2, log_std2))
    mean2_ref, log_std2_ref = actor_forward_ref(state2, params)
    assert mean2.shape == (batch2, action_dim)
    assert jnp.allclose(mean2, mean2_ref, atol=2e-2, rtol=2e-2)
    assert jnp.allclose(log_std2, log_std2_ref, atol=2e-2, rtol=2e-2)

    print("KERNEL_OK")
</pallas_src>

<mosaic_0001>
module attributes {stable_mosaic.version = 11 : i64} {
  func.func @_actor_kernel(%arg0: i32, %arg1: memref<8x16xf32, #tpu.memory_space<vmem>>, %arg2: memref<16x128xbf16, #tpu.memory_space<vmem>>, %arg3: memref<128x128xbf16, #tpu.memory_space<vmem>>, %arg4: memref<128x128xbf16, #tpu.memory_space<vmem>>, %arg5: memref<8x128xf32, #tpu.memory_space<vmem>>, %arg6: memref<8x128xf32, #tpu.memory_space<vmem>>) attributes {dimension_semantics = [#tpu.dimension_semantics<parallel>], iteration_bounds = array<i64: 1>, scalar_prefetch = 0 : i64, scratch_operands = 0 : i64, tpu.core_type = #tpu.core_type<tc>, window_params = [{transform_indices = @transform_0, window_bounds = array<i64: 8, 16>}, {pipeline_mode = #tpu.pipeline_mode<synchronous>, transform_indices = @transform_1, window_bounds = array<i64: 16, 128>}, {pipeline_mode = #tpu.pipeline_mode<synchronous>, transform_indices = @transform_2, window_bounds = array<i64: 128, 128>}, {pipeline_mode = #tpu.pipeline_mode<synchronous>, transform_indices = @transform_3, window_bounds = array<i64: 128, 128>}, {pipeline_mode = #tpu.pipeline_mode<synchronous>, transform_indices = @transform_4, window_bounds = array<i64: 8, 128>}, {transform_indices = @transform_5, window_bounds = array<i64: 8, 128>}]} {
    %c0 = arith.constant 0 : index
    %c0_0 = arith.constant 0 : index
    %0 = vector.load %arg5[%c0, %c0_0] : memref<8x128xf32, #tpu.memory_space<vmem>>, vector<1x128xf32>
    %c1 = arith.constant 1 : index
    %c0_1 = arith.constant 0 : index
    %1 = vector.load %arg5[%c1, %c0_1] : memref<8x128xf32, #tpu.memory_space<vmem>>, vector<1x128xf32>
    %c2 = arith.constant 2 : index
    %c0_2 = arith.constant 0 : index
    %2 = vector.load %arg5[%c2, %c0_2] : memref<8x128xf32, #tpu.memory_space<vmem>>, vector<1x128xf32>
    %c3 = arith.constant 3 : index
    %c0_3 = arith.constant 0 : index
    %3 = vector.load %arg5[%c3, %c0_3] : memref<8x128xf32, #tpu.memory_space<vmem>>, vector<1x128xf32>
    %c4 = arith.constant 4 : index
    %c0_4 = arith.constant 0 : index
    %4 = vector.load %arg5[%c4, %c0_4] : memref<8x128xf32, #tpu.memory_space<vmem>>, vector<1x128xf32>
    %c0_5 = arith.constant 0 : index
    %c0_6 = arith.constant 0 : index
    %5 = vector.load %arg1[%c0_5, %c0_6] : memref<8x16xf32, #tpu.memory_space<vmem>>, vector<8x16xf32>
    %6 = arith.truncf %5 : vector<8x16xf32> to vector<8x16xbf16>
    %c0_7 = arith.constant 0 : index
    %c0_8 = arith.constant 0 : index
    %7 = vector.load %arg2[%c0_7, %c0_8] : memref<16x128xbf16, #tpu.memory_space<vmem>>, vector<16x128xbf16>
    %cst = arith.constant dense<0.000000e+00> : vector<8x128xf32>
    %8 = tpu.matmul %6, %7, %cst {dimension_numbers = #tpu.dot_dimension_numbers<[1], [0], [0], [1], [0, 0, 1, 1], [], []>} : vector<8x16xbf16>, vector<16x128xbf16>, vector<8x128xf32> -> vector<8x128xf32>
    %9 = vector.broadcast %0 : vector<1x128xf32> to vector<8x128xf32>
    %10 = arith.addf %8, %9 : vector<8x128xf32>
    %cst_9 = arith.constant 0.000000e+00 : f32
    %11 = vector.broadcast %cst_9 : f32 to vector<8x128xf32>
    %12 = arith.maximumf %10, %11 : vector<8x128xf32>
    %13 = arith.truncf %12 : vector<8x128xf32> to vector<8x128xbf16>
    %c0_10 = arith.constant 0 : index
    %c0_11 = arith.constant 0 : index
    %14 = vector.load %arg3[%c0_10, %c0_11] : memref<128x128xbf16, #tpu.memory_space<vmem>>, vector<128x128xbf16>
    %cst_12 = arith.constant dense<0.000000e+00> : vector<8x128xf32>
    %15 = tpu.matmul %13, %14, %cst_12 {dimension_numbers = #tpu.dot_dimension_numbers<[1], [0], [0], [1], [0, 0, 1, 1], [], []>} : vector<8x128xbf16>, vector<128x128xbf16>, vector<8x128xf32> -> vector<8x128xf32>
    %16 = vector.broadcast %1 : vector<1x128xf32> to vector<8x128xf32>
    %17 = arith.addf %15, %16 : vector<8x128xf32>
    %cst_13 = arith.constant 0.000000e+00 : f32
    %18 = vector.broadcast %cst_13 : f32 to vector<8x128xf32>
    %19 = arith.maximumf %17, %18 : vector<8x128xf32>
    %20 = arith.truncf %19 : vector<8x128xf32> to vector<8x128xbf16>
    %c0_14 = arith.constant 0 : index
    %c0_15 = arith.constant 0 : index
    %21 = vector.load %arg4[%c0_14, %c0_15] : memref<128x128xbf16, #tpu.memory_space<vmem>>, vector<128x128xbf16>
    %cst_16 = arith.constant dense<0.000000e+00> : vector<8x128xf32>
    %22 = tpu.matmul %20, %21, %cst_16 {dimension_numbers = #tpu.dot_dimension_numbers<[1], [0], [0], [1], [0, 0, 1, 1], [], []>} : vector<8x128xbf16>, vector<128x128xbf16>, vector<8x128xf32> -> vector<8x128xf32>
    %23 = vector.broadcast %2 : vector<1x128xf32> to vector<8x128xf32>
    %24 = arith.addf %22, %23 : vector<8x128xf32>
    %25 = vector.broadcast %3 : vector<1x128xf32> to vector<8x128xf32>
    %26 = arith.maximumf %24, %25 : vector<8x128xf32>
    %27 = vector.broadcast %4 : vector<1x128xf32> to vector<8x128xf32>
    %28 = arith.minimumf %26, %27 : vector<8x128xf32>
    %c0_17 = arith.constant 0 : index
    %c0_18 = arith.constant 0 : index
    %29 = vector.load %arg6[%c0_17, %c0_18] : memref<8x128xf32, #tpu.memory_space<vmem>>, vector<8x128xf32>
    tpu.vector_store %arg6[%c0_17, %c0_18], %28 {strides = array<i32>} : memref<8x128xf32, #tpu.memory_space<vmem>>, vector<8x128xf32>,
    return
  }
  func.func @transform_0(%arg0: i32) -> (i32, i32) {
    %c0_i32 = arith.constant 0 : i32
    %c0_i32_0 = arith.constant 0 : i32
    return %arg0, %c0_i32 : i32, i32
  }
  func.func @transform_1(%arg0: i32) -> (i32, i32) {
    %c0_i32 = arith.constant 0 : i32
    %c0_i32_0 = arith.constant 0 : i32
    %c0_i32_1 = arith.constant 0 : i32
    return %c0_i32, %c0_i32_0 : i32, i32
  }
  func.func @transform_2(%arg0: i32) -> (i32, i32) {
    %c0_i32 = arith.constant 0 : i32
    %c0_i32_0 = arith.constant 0 : i32
    %c0_i32_1 = arith.constant 0 : i32
    return %c0_i32, %c0_i32_0 : i32, i32
  }
  func.func @transform_3(%arg0: i32) -> (i32, i32) {
    %c0_i32 = arith.constant 0 : i32
    %c0_i32_0 = arith.constant 0 : i32
    %c0_i32_1 = arith.constant 0 : i32
    return %c0_i32, %c0_i32_0 : i32, i32
  }
  func.func @transform_4(%arg0: i32) -> (i32, i32) {
    %c0_i32 = arith.constant 0 : i32
    %c0_i32_0 = arith.constant 0 : i32
    %c0_i32_1 = arith.constant 0 : i32
    return %c0_i32, %c0_i32_0 : i32, i32
  }
  func.func @transform_5(%arg0: i32) -> (i32, i32) {
    %c0_i32 = arith.constant 0 : i32
    %c0_i32_0 = arith.constant 0 : i32
    return %arg0, %c0_i32 : i32, i32
  }
}

</mosaic_0001>

<bundles_post_ra>
// kernel: tpu_custom_call.1
= control target key start
LH: loop header
LB: loop body
LE: loop exit
PB: predicated region body
PF: predicated region fallthrough
CT: control target
= control target key end

     0   :  { %10 = vsyncpa [#allocation3], 0  ;;  %s762_s0 = inlined_call_operand.hbm [shape: f32[8,16], index: 0, kind: input, shape index: {}]   ;;  %s763_s1 = inlined_call_operand.hbm [shape: bf16[16,128], index: 1, kind: input, shape index: {}]   ;;  %s764_s2 = inlined_call_operand.hbm [shape: bf16[128,128], index: 2, kind: input, shape index: {}]   ;;  %s765_s3 = inlined_call_operand.hbm [shape: bf16[128,128], index: 3, kind: input, shape index: {}]   ;;  %s766_s4 = inlined_call_operand.vmem [shape: f32[8,128], index: 4, kind: input, shape index: {}]   ;;  %s767_s5 = inlined_call_operand.hbm [shape: f32[8,128], index: 5, kind: output, shape index: {}]  }
   0x1   :  { %11 = vsyncpa [#allocation6], 0 }
   0x2   :  { %12 = vsyncpa [#allocation9], 0 }
   0x3   :  { %13 = vsyncpa [#allocation4], 0  ;;  %s619_s18 = smov [#allocation5]   ;;  %s501_s22 = scalar_lea.hbm %s763_s1, 128 }
   0x4   :  { %s29_s19 = sshll.u32 %s619_s18, 4  ;;  %p502_p0 = scmp.ne.s32.totalorder %s763_s1, %s501_s22  ;;  %s30_s19 = int_to_ptr.vmem [resolvable:$true] %s29_s19 }
   0x5   :  { %p505_p1 = scmp.lt.u32.totalorder %s501_s22, %s763_s1 }
   0x7   :  { %p507_p2 = pnand %p505_p1, %p502_p0 }
   0x9   :  { %510 = shalt.err (!%p507_p2)
}
   0xa   :  { %s511_s27 = scalar_lea.vmem %s30_s19, 128  ;;  %p516_p4 = scmp.lt.s32.totalorder %s30_s19, %s30_s19 }
   0xb   :  { %p512_p3 = scmp.ne.s32.totalorder %s30_s19, %s511_s27  ;;  %p517_p5 = scmp.lt.s32.totalorder %s511_s27, %s511_s27 }
   0xd   :  { %p518_p6 = por %p517_p5, %p516_p4 }
   0xf   :  { %p519_p7 = pnand %p518_p6, %p512_p3 }
  0x11   :  { %522 = shalt.err (!%p519_p7)
}
  0x12   :  { %s620_s28 = smov 64   ;;  %s621_s29 = smov 4  }
  0x13   :  { %35 = dma.hbm_to_vmem [thread:$0]  %s763_s1, 128, %s30_s19, [#allocation6], %s620_s28, %s620_s28, %s621_s29  }
  0x14   :  { %s622_s7 = smov [#allocation2]   ;;  %s623_s9 = smov [#allocation7]  }
  0x15   :  { %s20_s8 = sshll.u32 %s622_s7, 4  ;;  %s41_s10 = sshll.u32 %s623_s9, 4  ;;  %s21_s8 = int_to_ptr.vmem [resolvable:$true] %s20_s8  ;;  %s42_s10 = int_to_ptr.vmem [resolvable:$true] %s41_s10 }
  0x16   :  { %s523_s13 = scalar_lea.hbm %s762_s0, 128 }
  0x17   :  { %p524_p8 = scmp.ne.s32.totalorder %s762_s0, %s523_s13  ;;  %p527_p9 = scmp.lt.u32.totalorder %s523_s13, %s762_s0 }
  0x19   :  { %p529_p10 = pnand %p527_p9, %p524_p8 }
  0x1b   :  { %532 = shalt.err (!%p529_p10)
}
  0x1c   :  { %s533_s1 = scalar_lea.vmem %s21_s8, 128  ;;  %p538_p12 = scmp.lt.s32.totalorder %s21_s8, %s21_s8 }
  0x1d   :  { %p534_p11 = scmp.ne.s32.totalorder %s21_s8, %s533_s1  ;;  %p539_p13 = scmp.lt.s32.totalorder %s533_s1, %s533_s1 }
  0x1f   :  { %p540_p0 = por %p539_p13, %p538_p12 }
  0x21   :  { %p541_p1 = pnand %p540_p0, %p534_p11 }
  0x23   :  { %544 = shalt.err (!%p541_p1)
}
  0x24   :  { %23 = dma.hbm_to_vmem [thread:$0]  %s762_s0, 128, %s21_s8, [#allocation3]  }
  0x25   :  { %s545_s22 = scalar_lea.hbm %s764_s2, 1024 }
  0x26   :  { %p546_p2 = scmp.ne.s32.totalorder %s764_s2, %s545_s22  ;;  %p549_p3 = scmp.lt.u32.totalorder %s545_s22, %s764_s2 }
  0x28   :  { %p551_p4 = pnand %p549_p3, %p546_p2 }
  0x2a   :  { %554 = shalt.err (!%p551_p4)
}
  0x2b   :  { %s555_s27 = scalar_lea.vmem %s42_s10, 1024  ;;  %p560_p6 = scmp.lt.s32.totalorder %s42_s10, %s42_s10 }
  0x2c   :  { %p556_p5 = scmp.ne.s32.totalorder %s42_s10, %s555_s27  ;;  %p561_p7 = scmp.lt.s32.totalorder %s555_s27, %s555_s27 }
  0x2e   :  { %p562_p8 = por %p561_p7, %p560_p6 }
  0x30   :  { %p563_p9 = pnand %p562_p8, %p556_p5 }
  0x32   :  { %566 = shalt.err (!%p563_p9)
}
  0x33   :  { %47 = dma.hbm_to_vmem [thread:$0]  %s764_s2, 1024, %s42_s10, [#allocation6], %s620_s28, %s620_s28, %s621_s29  }
  0x34   :  { %s624_s6 = smov [#allocation8]   ;;  %s567_s11 = scalar_lea.hbm %s765_s3, 1024 }
  0x35   :  { %s53_s7 = sshll.u32 %s624_s6, 4  ;;  %p568_p10 = scmp.ne.s32.totalorder %s765_s3, %s567_s11  ;;  %s54_s7 = int_to_ptr.vmem [resolvable:$true] %s53_s7 }
  0x36   :  { %p571_p11 = scmp.lt.u32.totalorder %s567_s11, %s765_s3 }
  0x38   :  { %p573_p12 = pnand %p571_p11, %p568_p10 }
  0x3a   :  { %576 = shalt.err (!%p573_p12)
}
  0x3b   :  { %s577_s16 = scalar_lea.vmem %s54_s7, 1024  ;;  %p582_p0 = scmp.lt.s32.totalorder %s54_s7, %s54_s7 }
  0x3c   :  { %p578_p13 = scmp.ne.s32.totalorder %s54_s7, %s577_s16  ;;  %p583_p1 = scmp.lt.s32.totalorder %s577_s16, %s577_s16 }
  0x3e   :  { %p584_p2 = por %p583_p1, %p582_p0 }
  0x40   :  { %p585_p3 = pnand %p584_p2, %p578_p13 }
  0x42   :  { %588 = shalt.err (!%p585_p3)
}
  0x43   :  { %59 = dma.hbm_to_vmem [thread:$0]  %s765_s3, 1024, %s54_s7, [#allocation9], %s620_s28, %s620_s28, %s621_s29  }
  0x44   :  { %611 = dma.done.wait [#allocation3], 128  }
  0x45   :  { %612 = vsyncadd [#allocation3], 4294967168 }
  0x46   :  { %613 = dma.done.wait [#allocation6], 1152  }
  0x47   :  { %614 = vsyncadd [#allocation6], 4294966144 }
  0x48   :  { %615 = dma.done.wait [#allocation9], 1024  }
  0x49   :  { %616 = vsyncadd [#allocation9], 4294966272  ;;  %v625_v0 = vmov 0.0   ;;  %vm626_vm0 = vmmov 0   ;;  %v484_v1 = vld [vmem:[#allocation5] sm:$0xff]   ;;  %v80_v2 = vld [vmem:[#allocation2] sm:$0xff] }
  0x4a   :  { %429 = vmatprep.subr.bf16.mxu0 %v625_v0  ;;  %431 = vmatprep.mubr.msk.bf16.mxu0 %vm626_vm0, %v625_v0  ;;  %v81_v3 = vpack.c.bf16 %v80_v2, %v80_v2  ;;  %vm94_vm1 = vcmask 130048   ;;  %v485_v4 = vld [vmem:[#allocation7] sm:$0xff]   ;;  %v486_v5 = vld [vmem:[#allocation7 + $0x8] sm:$0xff]   ;;  %v487_v6 = vld [vmem:[#allocation7 + $0x10] sm:$0xff]   ;;  %s627_s23 = smov [#allocation10]  }
  0x4b   :  { %435 = vmatprep.subr.bf16.mxu1 %v625_v0  ;;  %451 = vmatprep.mubr.msk.bf16.mxu1 %vm626_vm0, %v625_v0  ;;  %v488_v7 = vld [vmem:[#allocation7 + $0x18] sm:$0xff]   ;;  %v489_v8 = vld [vmem:[#allocation7 + $0x20] sm:$0xff]   ;;  %v490_v9 = vld [vmem:[#allocation7 + $0x28] sm:$0xff]   ;;  %s375_s24 = sshll.u32 %s627_s23, 4  ;;  %s376_s24 = int_to_ptr.vmem [resolvable:$true] %s375_s24 }
  0x4c   :  { %430 = vmatpush3.bf16.msra.mxu0 %v484_v1  ;;  %436 = vmatpush3.bf16.msra.mxu1 %v485_v4  ;;  %v491_v10 = vld [vmem:[#allocation7 + $0x30] sm:$0xff]   ;;  %v492_v11 = vld [vmem:[#allocation7 + $0x38] sm:$0xff]   ;;  %v493_v12 = vld [vmem:[#allocation8] sm:$0xff]   ;;  %s589_s25 = scalar_lea.vmem %s376_s24, 128  ;;  %p594_p5 = scmp.lt.s32.totalorder %s376_s24, %s376_s24 }
  0x4d   :  { %455 = vmatprep.subr.bf16.mxu0 %v625_v0  ;;  %437 = vmatprep.subr.bf16.mxu1 %v625_v0  ;;  %v494_v13 = vld [vmem:[#allocation8 + $0x8] sm:$0xff]   ;;  %v495_v14 = vld [vmem:[#allocation8 + $0x10] sm:$0xff]   ;;  %v496_v15 = vld [vmem:[#allocation8 + $0x18] sm:$0xff]   ;;  %p590_p4 = scmp.ne.s32.totalorder %s376_s24, %s589_s25  ;;  %p595_p6 = scmp.lt.s32.totalorder %s589_s25, %s589_s25 }
  0x4e   :  { %v497_v16 = vld [vmem:[#allocation8 + $0x20] sm:$0xff]   ;;  %v498_v17 = vld [vmem:[#allocation8 + $0x28] sm:$0xff]   ;;  %v386_v18 = vld [vmem:[%s766_s4] ss:$0 sm:$0xff] }
  0x4f   :  { %432 = vmatmul.mubr.msk.bf16.vlgmr.msra.gmra.mrb[0].mxu0 %vm94_vm1, %v81_v3  ;;  %v499_v26 = vld [vmem:[#allocation8 + $0x30] sm:$0xff]   ;;  %v500_v27 = vld [vmem:[#allocation8 + $0x38] sm:$0xff]   ;;  %p596_p7 = por %p595_p6, %p594_p5 }
  0x50   :  { %471 = vmatprep.mubr.msk.bf16.mxu0 %vm626_vm0, %v625_v0  ;;  %438 = vmatpush3.bf16.msra.mxu1 %v486_v5  ;;  %v389_v28 = vld [vmem:[%s766_s4 + $0x1] ss:$0 sm:$0xff]  ;;  %v398_v36 = vld [vmem:[%s766_s4 + $0x2] ss:$0 sm:$0xff]  ;;  %v407_v37 = vld [vmem:[%s766_s4 + $0x3] ss:$0 sm:$0xff] }
  0x51   :  { %439 = vmatprep.subr.bf16.mxu1 %v625_v0  ;;  %456 = vmatpush3.bf16.msra.mxu0 %v493_v12  ;;  %v408_v42 = vld [vmem:[%s766_s4 + $0x4] ss:$0 sm:$0xff]  ;;  %p597_p8 = pnand %p596_p7, %p590_p4 }
  0x52   :  { %457 = vmatprep.subr.bf16.mxu0 %v625_v0 }
  0x54   :  { %440 = vmatpush3.bf16.msra.mxu1 %v487_v6 }
  0x55   :  { %441 = vmatprep.subr.bf16.mxu1 %v625_v0  ;;  %458 = vmatpush3.bf16.msra.mxu0 %v494_v13 }
  0x56   :  { %459 = vmatprep.subr.bf16.mxu0 %v625_v0 }
  0x58   :  { %442 = vmatpush3.bf16.msra.mxu1 %v488_v7 }
  0x59   :  { %443 = vmatprep.subr.bf16.mxu1 %v625_v0  ;;  %460 = vmatpush3.bf16.msra.mxu0 %v495_v14 }
  0x5a   :  { %461 = vmatprep.subr.bf16.mxu0 %v625_v0 }
  0x5c   :  { %444 = vmatpush3.bf16.msra.mxu1 %v489_v8 }
  0x5d   :  { %445 = vmatprep.subr.bf16.mxu1 %v625_v0  ;;  %462 = vmatpush3.bf16.msra.mxu0 %v496_v15 }
  0x5e   :  { %463 = vmatprep.subr.bf16.mxu0 %v625_v0 }
  0x60   :  { %446 = vmatpush3.bf16.msra.mxu1 %v490_v9 }
  0x61   :  { %447 = vmatprep.subr.bf16.mxu1 %v625_v0  ;;  %464 = vmatpush3.bf16.msra.mxu0 %v497_v16 }
  0x62   :  { %465 = vmatprep.subr.bf16.mxu0 %v625_v0 }
  0x64   :  { %448 = vmatpush3.bf16.msra.mxu1 %v491_v10 }
  0x65   :  { %449 = vmatprep.subr.bf16.mxu1 %v625_v0  ;;  %466 = vmatpush3.bf16.msra.mxu0 %v498_v17 }
  0x66   :  { %467 = vmatprep.subr.bf16.mxu0 %v625_v0 }
  0x68   :  { %450 = vmatpush3.bf16.msra.mxu1 %v492_v11 }
  0x69   :  { %468 = vmatpush3.bf16.msra.mxu0 %v499_v26 }
  0x6a   :  { %469 = vmatprep.subr.bf16.mxu0 %v625_v0 }
  0x6d   :  { %470 = vmatpush3.bf16.msra.mxu0 %v500_v27 }
 0x122   :  { %v132_v19 = vpop.f32.mrb[0].mxu0 }
 0x123   :  { %v133_v20 = vadd.f32 %v386_v18, %v132_v19  ;;  %v433_v21 = vpop.f32.mrb[1].mxu0 }
 0x124   :  { %v135_v22 = vpop.f32.mrb[2].mxu0 }
 0x125   :  { %v138_v23 = vmax.f32 %v133_v20, 0.0  ;;  %v434_v24 = vpop.f32.mrb[3].mxu0 }
 0x127   :  { %v139_v25 = vpack.c.bf16 %v138_v23, %v138_v23 }
 0x129   :  { %452 = vmatmul.mubr.bf16.vlgmr.msra.gmra.mrb[0].mxu1 %v139_v25 }
 0x1fc   :  { %v242_v29 = vpop.f32.mrb[0].mxu1 }
 0x1fd   :  { %v243_v30 = vadd.f32 %v389_v28, %v242_v29  ;;  %v453_v31 = vpop.f32.mrb[1].mxu1 }
 0x1fe   :  { %v245_v32 = vpop.f32.mrb[2].mxu1 }
 0x1ff   :  { %v248_v33 = vmax.f32 %v243_v30, 0.0  ;;  %v454_v34 = vpop.f32.mrb[3].mxu1 }
 0x201   :  { %v249_v35 = vpack.c.bf16 %v248_v33, %v248_v33 }
 0x203   :  { %472 = vmatmul.mubr.bf16.vlgmr.msra.gmra.mrb[4].mxu0 %v249_v35 }
 0x2d6   :  { %v352_v38 = vpop.f32.mrb[4].mxu0 }
 0x2d7   :  { %v353_v39 = vadd.f32 %v398_v36, %v352_v38  ;;  %v473_v40 = vpop.f32.mrb[5].mxu0 }
 0x2d8   :  { %v355_v41 = vpop.f32.mrb[6].mxu0 }
 0x2d9   :  { %v362_v43 = vmax.f32 %v353_v39, %v407_v37  ;;  %v474_v44 = vpop.f32.mrb[7].mxu0 }
 0x2db   :  { %v367_v45 = vmin.f32 %v362_v43, %v408_v42 }
 0x2dd   :  { %368 = vst [vmem:[#allocation10] sm:$0xff] %v367_v45 }
 0x2de   :  { %600 = shalt.err (!%p597_p8)
}
 0x2df   :  { %s601_s0 = scalar_lea.hbm %s767_s5, 128 }
 0x2e0   :  { %p602_p9 = scmp.ne.s32.totalorder %s767_s5, %s601_s0  ;;  %p605_p10 = scmp.lt.u32.totalorder %s601_s0, %s767_s5 }
 0x2e2   :  { %p607_p11 = pnand %p605_p10, %p602_p9 }
 0x2e4   :  { %610 = shalt.err (!%p607_p11)
}
 0x2e5   :  { %378 = dma.vmem_to_hbm [thread:$0]  %s376_s24, 128, %s767_s5, [#allocation4]  }
 0x2e6   :  { %617 = dma.done.wait [#allocation4], 128  }
 0x2e7   :  { %618 = vsyncadd [#allocation4], 4294967168 }
 0x2e8   :  { %382 = vsyncpa [#allocation3], 1 }
 0x2e9   :  { %383 = vsyncpa [#allocation6], 1 }
 0x2ea   :  { %384 = vsyncpa [#allocation9], 1 }
 0x2eb   :  { %385 = vsyncpa [#allocation4], 1 }

</bundles_post_ra>
